<compile_context>
chip_gen: v7x
topology: tpu7x:2x2x1
jax: 0.10.0
libtpu: 0.0.40
codegen_flags: <defaults>
</compile_context>

<pallas_src>
import jax
import jax.numpy as jnp
from jax.experimental import pallas as pl
from jax.experimental.pallas import tpu as pltpu

BETA = 0.11
_HALF_OVER_BETA = 0.5 / BETA
_HALF_BETA = 0.5 * BETA
LANES = 128
_SUBLANE = {4: 8, 2: 16, 1: 32}          # sublane tile by dtype itemsize
_VMEM_LIMIT = 32 * 1024 * 1024           # scoped-VMEM cap, safe on v5e/v6e/v7x
_PIPELINE_BUDGET = 12 * 1024 * 1024      # bytes for all double-buffered inputs


def _huber(d):
    """Elementwise smooth-L1 in d.dtype (bf16 math stays bf16 on v6e/v7x)."""
    diff = jnp.abs(d)
    return jnp.where(diff < BETA, (_HALF_OVER_BETA * diff) * diff,
                     diff - _HALF_BETA)


def _reduce_to_vreg(loss, out_ref):
    """Fold a (row_tile, 128) tile into one (8, 128) f32 partial (VPU adds)."""
    loss = loss.astype(jnp.float32)      # upcast only for accumulation
    r = loss.shape[0]
    out_ref[...] = jnp.sum(loss.reshape(r // 8, 8, LANES), axis=0)


def _huber_sum_kernel(d_ref, out_ref):
    # d_ref: precomputed (mask-folded) difference tile.
    _reduce_to_vreg(_huber(d_ref[...]), out_ref)


def _huber_diff_sum_kernel(p_ref, t_ref, out_ref):
    # Fused path: the subtraction happens in VMEM; HBM traffic is just the
    # two input reads (no materialized diff intermediate).
    _reduce_to_vreg(_huber(p_ref[...] - t_ref[...]), out_ref)


def _pick_row_tile(rows, dtype, max_rows, n_streams):
    """Row tile: multiple of the dtype's sublane count, sized for ~2-3 MiB per
    pipeline buffer, capped so the 'parallel' grid has >= 2 steps on
    medium/large inputs (keeps both v7x TensorCores streaming)."""
    itemsize = jnp.dtype(dtype).itemsize
    s = _SUBLANE.get(itemsize, 8)
    per_buffer = _PIPELINE_BUDGET // (2 * n_streams)   # double-buffered inputs
    t = min(int(max_rows), per_buffer // (LANES * itemsize))
    t = min(t, pl.cdiv(rows, 2))
    return max(s, (t // s) * s)


def _partial_sums(kernel, inputs, row_tile, num_tiles):
    """Grid of independent row tiles, each writing a disjoint (8,128) partial."""
    return pl.pallas_call(
        kernel,
        out_shape=jax.ShapeDtypeStruct((num_tiles * 8, LANES), jnp.float32),
        grid=(num_tiles,),
        in_specs=[pl.BlockSpec((row_tile, LANES), lambda g: (g, 0))
                  for _ in inputs],
        out_specs=pl.BlockSpec((8, LANES), lambda g: (g, 0)),
        compiler_params=pltpu.CompilerParams(
            dimension_semantics=("parallel",),
            vmem_limit_bytes=_VMEM_LIMIT),
    )(*inputs)


def _fused_loss_sum(predictions, targets, max_rows):
    """mask=None and B*N*7 % 128 == 0: stream pred/tgt straight to the kernel."""
    rows = predictions.size // LANES
    p2 = predictions.reshape(rows, LANES)   # free reshape (contiguous)
    t2 = targets.reshape(rows, LANES)
    row_tile = _pick_row_tile(rows, p2.dtype, max_rows, n_streams=2)
    num_tiles = rows // row_tile            # >= 1 (caller checks rows >= sublane)
    main = num_tiles * row_tile
    loss_sum = jnp.sum(_partial_sums(_huber_diff_sum_kernel, (p2, t2),
                                     row_tile, num_tiles))
    if main < rows:
        # Ragged remainder (< row_tile rows): a tiny XLA reduce fusion that
        # reads only the tail bytes -- cheaper than padding/copying the inputs.
        tail = p2[main:].astype(jnp.float32) - t2[main:].astype(jnp.float32)
        loss_sum = loss_sum + jnp.sum(_huber(tail))
    return loss_sum


def _slab_loss_sum(d, max_rows):
    """Generic path: one lane-dense (rows, 128) slab of the (mask-folded)
    difference.  subtract + mask-mul + pad + reshape fuse into a single XLA
    pass; zero padding contributes exactly 0 loss."""
    flat = d.reshape(-1)
    total = flat.shape[0]
    rows = pl.cdiv(total, LANES)
    row_tile = _pick_row_tile(rows, flat.dtype, max_rows, n_streams=1)
    num_tiles = pl.cdiv(rows, row_tile)
    rows = num_tiles * row_tile
    pad = rows * LANES - total
    if pad:
        flat = jnp.pad(flat, (0, pad))
    d2 = flat.reshape(rows, LANES)
    return jnp.sum(_partial_sums(_huber_sum_kernel, (d2,), row_tile, num_tiles))


def regression_loss(predictions, targets, mask=None, *, max_rows_per_block=8192):
    """Pallas equivalent of RegressionLoss.forward.

    predictions: (B, N, 7) box predictions
    targets:     (B, N, 7) box targets
    mask:        (B, N) boolean mask of valid boxes, or None
    returns scalar float32 loss
    """
    if targets.dtype != predictions.dtype:
        targets = targets.astype(predictions.dtype)
    total = predictions.size
    sublane = _SUBLANE.get(jnp.dtype(predictions.dtype).itemsize, 8)

    if mask is None:
        if total % LANES == 0 and (total // LANES) >= sublane:
            loss_sum = _fused_loss_sum(predictions, targets, max_rows_per_block)
        else:
            # Ragged element count: single materialized lane-dense diff slab.
            loss_sum = _slab_loss_sum(predictions - targets, max_rows_per_block)
        return loss_sum / jnp.float32(total)

    # Masked path: fold the 0/1 mask into the difference in the wrapper
    # (masked boxes give d == 0 and huber(0) == 0, so they contribute nothing).
    # TODO(synk): for bf16 inputs, upcast before subtracting here if bit-parity
    # with an f32 reference matters (bf16 cancellation).
    d = (predictions - targets) * mask.astype(predictions.dtype)[..., None]
    loss_sum = _slab_loss_sum(d, max_rows_per_block)
    denom = jnp.sum(mask.astype(jnp.float32)) + 1e-6
    return loss_sum / denom


def _reference(predictions, targets, mask=None):
    p = predictions.astype(jnp.float32)
    t = targets.astype(jnp.float32)
    diff = jnp.abs(p - t)
    loss = jnp.where(diff < BETA, 0.5 * diff * diff / BETA, diff - 0.5 * BETA)
    if mask is not None:
        m = mask.astype(jnp.float32)[..., None]
        loss = loss * m
        return loss.sum() / (m.sum() + 1e-6)
    return loss.mean()


if __name__ == "__main__":
    key = jax.random.PRNGKey(0)
    k1, k2, k3 = jax.random.split(key, 3)
    C = 7

    def check(pred, tgt, msk, name, **kw):
        out = regression_loss(pred, tgt, msk, **kw)
        jax.block_until_ready(out)
        ref = _reference(pred, tgt, msk)
        assert jnp.allclose(out, ref, atol=1e-5, rtol=1e-4), (name, out, ref)

    # 1) small masked case (ragged total -> slab path, single grid step)
    B, N = 2, 16
    pred = jax.random.normal(k1, (B, N, C), dtype=jnp.float32)
    tgt = jax.random.normal(k2, (B, N, C), dtype=jnp.float32)
    msk = jax.random.bernoulli(k3, p=0.7, shape=(B, N))
    check(pred, tgt, msk, "masked_small")

    # 2) same inputs, mask=None (ragged total -> slab path, plain mean)
    check(pred, tgt, None, "plain_small")

    # 3) multi-step "parallel" grid on the slab path (tiny row tile)
    B2, N2 = 2, 200
    p2 = jax.random.normal(k1, (B2, N2, C), dtype=jnp.float32)
    t2 = jax.random.normal(k2, (B2, N2, C), dtype=jnp.float32)
    m2 = jax.random.bernoulli(k3, p=0.5, shape=(B2, N2))
    check(p2, t2, m2, "masked_multistep", max_rows_per_block=8)

    # 4) mask=None with B*N*7 % 128 == 0 -> fused two-input kernel, 2 grid steps
    B3, N3 = 4, 512
    p3 = jax.random.normal(k1, (B3, N3, C), dtype=jnp.float32)
    t3 = jax.random.normal(k2, (B3, N3, C), dtype=jnp.float32)
    check(p3, t3, None, "fused_plain")

    # 5) fused path with a ragged row remainder handled in the wrapper
    B4, N4 = 2, 128
    p4 = jax.random.normal(k1, (B4, N4, C), dtype=jnp.float32)
    t4 = jax.random.normal(k2, (B4, N4, C), dtype=jnp.float32)
    check(p4, t4, None, "fused_tail")

    print("KERNEL_OK")
</pallas_src>

<mosaic_0001>
module attributes {stable_mosaic.version = 11 : i64} {
  func.func @_huber_sum_kernel(%arg0: i32, %arg1: memref<8x128xf32, #tpu.memory_space<vmem>>, %arg2: memref<8x128xf32, #tpu.memory_space<vmem>>) attributes {dimension_semantics = [#tpu.dimension_semantics<parallel>], iteration_bounds = array<i64: 1>, scalar_prefetch = 0 : i64, scratch_operands = 0 : i64, tpu.core_type = #tpu.core_type<tc>, window_params = [{transform_indices = @transform_0, window_bounds = array<i64: 8, 128>}, {transform_indices = @transform_1, window_bounds = array<i64: 8, 128>}]} {
    %c0 = arith.constant 0 : index
    %c0_0 = arith.constant 0 : index
    %0 = vector.load %arg1[%c0, %c0_0] : memref<8x128xf32, #tpu.memory_space<vmem>>, vector<8x128xf32>
    %1 = math.absf %0 : vector<8x128xf32>
    %cst = arith.constant 1.100000e-01 : f32
    %2 = vector.broadcast %cst : f32 to vector<8x128xf32>
    %3 = arith.cmpf olt, %1, %2 : vector<8x128xf32>
    %cst_1 = arith.constant 4.5454545 : f32
    %4 = vector.broadcast %cst_1 : f32 to vector<8x128xf32>
    %5 = arith.mulf %4, %1 : vector<8x128xf32>
    %6 = arith.mulf %5, %1 : vector<8x128xf32>
    %cst_2 = arith.constant 5.500000e-02 : f32
    %7 = vector.broadcast %cst_2 : f32 to vector<8x128xf32>
    %8 = arith.subf %1, %7 : vector<8x128xf32>
    %9 = arith.select %3, %6, %8 : vector<8x128xi1>, vector<8x128xf32>
    %10 = vector.shape_cast %9 : vector<8x128xf32> to vector<1x8x128xf32>
    %cst_3 = arith.constant dense<0.000000e+00> : vector<8x128xf32>
    %11 = vector.multi_reduction <add>, %10, %cst_3 [0] : vector<1x8x128xf32> to vector<8x128xf32>
    %c0_4 = arith.constant 0 : index
    %c0_5 = arith.constant 0 : index
    %12 = vector.load %arg2[%c0_4, %c0_5] : memref<8x128xf32, #tpu.memory_space<vmem>>, vector<8x128xf32>
    tpu.vector_store %arg2[%c0_4, %c0_5], %11 {strides = array<i32>} : memref<8x128xf32, #tpu.memory_space<vmem>>, vector<8x128xf32>,
    return
  }
  func.func @transform_0(%arg0: i32) -> (i32, i32) {
    %c0_i32 = arith.constant 0 : i32
    %c0_i32_0 = arith.constant 0 : i32
    return %arg0, %c0_i32 : i32, i32
  }
  func.func @transform_1(%arg0: i32) -> (i32, i32) {
    %c0_i32 = arith.constant 0 : i32
    %c0_i32_0 = arith.constant 0 : i32
    return %arg0, %c0_i32 : i32, i32
  }
}

</mosaic_0001>

<bundles_post_ra>
// kernel: tpu_custom_call.1
= control target key start
LH: loop header
LB: loop body
LE: loop exit
PB: predicated region body
PF: predicated region fallthrough
CT: control target
= control target key end

     0   :  { %6 = vsyncpa [#allocation3], 0  ;;  %s132_s0 = inlined_call_operand.hbm [shape: f32[8,128], index: 0, kind: input, shape index: {}]   ;;  %s133_s1 = inlined_call_operand.hbm [shape: f32[8,128], index: 1, kind: output, shape index: {}]  }
   0x1   :  { %7 = vsyncpa [#allocation4], 0  ;;  %s96_s6 = smov [#allocation2]   ;;  %s48_s10 = scalar_lea.hbm %s132_s0, 128 }
   0x2   :  { %s14_s7 = sshll.u32 %s96_s6, 4  ;;  %p49_p0 = scmp.ne.s32.totalorder %s132_s0, %s48_s10  ;;  %s15_s7 = int_to_ptr.vmem [resolvable:$true] %s14_s7 }
   0x3   :  { %p52_p1 = scmp.lt.u32.totalorder %s48_s10, %s132_s0 }
   0x5   :  { %p54_p2 = pnand %p52_p1, %p49_p0 }
   0x7   :  { %57 = shalt.err (!%p54_p2)
}
   0x8   :  { %s58_s15 = scalar_lea.vmem %s15_s7, 128  ;;  %p63_p4 = scmp.lt.s32.totalorder %s15_s7, %s15_s7 }
   0x9   :  { %p59_p3 = scmp.ne.s32.totalorder %s15_s7, %s58_s15  ;;  %p64_p5 = scmp.lt.s32.totalorder %s58_s15, %s58_s15 }
   0xb   :  { %p65_p6 = por %p64_p5, %p63_p4 }
   0xd   :  { %p66_p7 = pnand %p65_p6, %p59_p3 }
   0xf   :  { %69 = shalt.err (!%p66_p7)
}
  0x10   :  { %17 = dma.hbm_to_vmem [thread:$0]  %s132_s0, 128, %s15_s7, [#allocation3]  }
  0x11   :  { %92 = dma.done.wait [#allocation3], 128  }
  0x12   :  { %93 = vsyncadd [#allocation3], 4294967168  ;;  %v21_v0 = vld [vmem:[#allocation2] sm:$0xff]  ;;  %s97_s18 = smov [#allocation5]  }
  0x13   :  { %v22_v1 = vand.u32 2147483647, %v21_v0  ;;  %s36_s19 = sshll.u32 %s97_s18, 4  ;;  %s37_s19 = int_to_ptr.vmem [resolvable:$true] %s36_s19 }
  0x14   :  { %s70_s20 = scalar_lea.vmem %s37_s19, 128  ;;  %p75_p9 = scmp.lt.s32.totalorder %s37_s19, %s37_s19 }
  0x15   :  { %v24_v2 = vmul.f32 4.5454545, %v22_v1  ;;  %v45_v3 = vadd.f32 -0.055, %v22_v1  ;;  %vm23_vm0 = vcmp.lt.f32.partialorder %v22_v1, 0.11  ;;  %p71_p8 = scmp.ne.s32.totalorder %s37_s19, %s70_s20  ;;  %p76_p10 = scmp.lt.s32.totalorder %s70_s20, %s70_s20 }
  0x17   :  { %v25_v4 = vmul.f32 %v24_v2, %v22_v1  ;;  %p77_p11 = por %p76_p10, %p75_p9 }
  0x19   :  { %v27_v5 = vsel %vm23_vm0, %v25_v4, %v45_v3  ;;  %p78_p12 = pnand %p77_p11, %p71_p8 }
  0x1a   :  { %29 = vst [vmem:[#allocation5] sm:$0xff] %v27_v5 }
  0x1b   :  { %81 = shalt.err (!%p78_p12)
}
  0x1c   :  { %s82_s22 = scalar_lea.hbm %s133_s1, 128 }
  0x1d   :  { %p83_p13 = scmp.ne.s32.totalorder %s133_s1, %s82_s22  ;;  %p86_p0 = scmp.lt.u32.totalorder %s82_s22, %s133_s1 }
  0x1f   :  { %p88_p1 = pnand %p86_p0, %p83_p13 }
  0x21   :  { %91 = shalt.err (!%p88_p1)
}
  0x22   :  { %39 = dma.vmem_to_hbm [thread:$0]  %s37_s19, 128, %s133_s1, [#allocation4]  }
  0x23   :  { %94 = dma.done.wait [#allocation4], 128  }
  0x24   :  { %95 = vsyncadd [#allocation4], 4294967168 }
  0x25   :  { %43 = vsyncpa [#allocation3], 1 }
  0x26   :  { %44 = vsyncpa [#allocation4], 1 }

</bundles_post_ra>
